<compile_context>
chip_gen: v7x
topology: tpu7x:2x2x1
jax: 0.10.0
libtpu: 0.0.40
codegen_flags: <defaults>
</compile_context>

<pallas_src>
import jax
import jax.numpy as jnp
from jax.experimental import pallas as pl
from jax.experimental.pallas import tpu as pltpu

_LANE = 128


# ----------------------------------------------------------------------------
# Kernels
# ----------------------------------------------------------------------------
def _median_pool1d_kernel(x_ref, o_ref):
    """Full-row tile (TB, L): one XLU roll + one VPU max."""
    x = x_ref[...]
    L = x.shape[-1]
    # x1[:, i] = x[:, (i + 1) % L]  (jnp.roll convention: shift = L - 1).
    # NB: pltpu.roll requires a non-negative axis -> axis=1 (lane axis).
    x1 = pltpu.roll(x, shift=L - 1, axis=1)
    o_ref[...] = jnp.maximum(x, x1)


def _median_pool1d_l_tiled_kernel(x_ref, halo_ref, o_ref):
    """L-tiled path: (TB, TL) tile plus a (TB, 128) halo holding the first
    lanes of the *next* L-tile (circularly), so the shift-by-one crosses the
    tile boundary correctly."""
    x = x_ref[...]
    tl = x.shape[-1]
    x1 = pltpu.roll(x, shift=tl - 1, axis=1)          # local shift-by-one
    lane = jax.lax.broadcasted_iota(jnp.int32, x.shape, 1)
    nxt = jnp.where(lane == tl - 1, halo_ref[:, 0:1], x1)
    o_ref[...] = jnp.maximum(x, nxt)


# ----------------------------------------------------------------------------
# Tile selection
# ----------------------------------------------------------------------------
def _sublane(itemsize):
    return max(8, 32 // max(int(itemsize), 1))


def _pick_block_b(B, L, itemsize, target_tile_bytes):
    """Largest batch tile (multiple of the sublane quantum) under budget."""
    sub = _sublane(itemsize)
    row_bytes = L * itemsize
    cap = max(1, target_tile_bytes // row_bytes)
    if B <= cap:
        return B
    tb = (cap // sub) * sub
    if tb <= 0:
        # One row already exceeds the budget: thinnest legal slab, NOT the
        # whole batch (the old fallback could blow VMEM, worst on v7x).
        return min(B, sub)
    return tb


def _pick_block_l(L, tb, itemsize, target_tile_bytes):
    """Largest TL that is a multiple of 128, divides L, and fits the budget."""
    cap = max(_LANE, target_tile_bytes // max(1, tb * itemsize))
    tl = min((cap // _LANE) * _LANE, L)
    while tl > _LANE and L % tl != 0:
        tl -= _LANE
    return tl if L % tl == 0 else None


# ----------------------------------------------------------------------------
# pallas_call wrappers
# ----------------------------------------------------------------------------
def _full_row_call(x, tb):
    B, L = x.shape
    itemsize = jnp.dtype(x.dtype).itemsize
    tile_bytes = tb * L * itemsize
    # 2 in + 2 out double-buffered tiles + headroom; explicit so v5e's 16 MiB
    # default scoped limit never silently shrinks the pipeline.
    vmem_limit = int(min(48 << 20, max(16 << 20, 4 * tile_bytes + (4 << 20))))
    cost = pl.CostEstimate(flops=B * L, transcendentals=0,
                           bytes_accessed=2 * B * L * itemsize)
    return pl.pallas_call(
        _median_pool1d_kernel,
        out_shape=jax.ShapeDtypeStruct((B, L), x.dtype),
        grid_spec=pl.GridSpec(
            grid=(pl.cdiv(B, tb),),
            in_specs=[pl.BlockSpec((tb, L), lambda i: (i, 0))],
            out_specs=pl.BlockSpec((tb, L), lambda i: (i, 0)),
        ),
        compiler_params=pltpu.CompilerParams(
            dimension_semantics=("parallel",),
            vmem_limit_bytes=vmem_limit),
        cost_estimate=cost,
    )(x)


def _l_tiled_call(x, tb, tl):
    B, L = x.shape
    itemsize = jnp.dtype(x.dtype).itemsize
    n_l = L // tl
    tl_blocks = tl // _LANE
    main_bytes = tb * tl * itemsize
    halo_bytes = tb * _LANE * itemsize
    vmem_limit = int(min(48 << 20,
                         max(16 << 20,
                             4 * main_bytes + 2 * halo_bytes + (4 << 20))))
    cost = pl.CostEstimate(flops=B * L, transcendentals=0,
                           bytes_accessed=(2 * B * L + B * _LANE * n_l) * itemsize)

    def halo_map(i, j):
        # First 128 lanes of the next L-tile (wrapping == the torch padding).
        return (i, ((j + 1) % n_l) * tl_blocks)

    return pl.pallas_call(
        _median_pool1d_l_tiled_kernel,
        out_shape=jax.ShapeDtypeStruct((B, L), x.dtype),
        grid_spec=pl.GridSpec(
            grid=(pl.cdiv(B, tb), n_l),
            in_specs=[pl.BlockSpec((tb, tl), lambda i, j: (i, j)),
                      pl.BlockSpec((tb, _LANE), halo_map)],
            out_specs=pl.BlockSpec((tb, tl), lambda i, j: (i, j)),
        ),
        compiler_params=pltpu.CompilerParams(
            dimension_semantics=("parallel", "parallel"),
            vmem_limit_bytes=vmem_limit),
        cost_estimate=cost,
    )(x, x)  # same array twice: main tile + halo tile


def median_pool1d(x, *, block_b=None, block_l=None, target_tile_bytes=4 << 20):
    """x: (B, L) array. Returns (B, L) matching MedianPool1d.forward.

    target_tile_bytes ~4 MiB is the v6e sweet spot and safe on v5e (explicit
    vmem_limit_bytes is set); on v7x pass ~8 MiB to amortize per-step
    overhead against its faster HBM.
    """
    B, L = x.shape
    itemsize = jnp.dtype(x.dtype).itemsize

    # Lane-dense last dim: pad L up to a multiple of 128 with *circular*
    # columns so stores are unmasked and the in-kernel shift still picks up
    # the true wrap value at column L-1; padded output columns are sliced off.
    Lp = -(-L // _LANE) * _LANE
    xw = x if Lp == L else jnp.pad(x, ((0, 0), (0, Lp - L)), mode="wrap")

    sub = _sublane(itemsize)
    min_row_tile_bytes = min(B, sub) * Lp * itemsize

    out = None
    if block_l is not None or min_row_tile_bytes > target_tile_bytes:
        # L-tiled halo path: full rows don't fit the tile budget (long
        # sequences; matters most on v7x's 64 MiB VMEM / 2 TensorCores),
        # or explicitly requested.
        tb = B if B <= sub else sub
        tl = (block_l if block_l is not None
              else _pick_block_l(Lp, tb, itemsize, target_tile_bytes))
        if tl is not None and Lp % tl == 0 and tl % _LANE == 0:
            out = _l_tiled_call(xw, tb, tl)
    if out is None:
        tb = (block_b if block_b is not None
              else _pick_block_b(B, Lp, itemsize, target_tile_bytes))
        out = _full_row_call(xw, tb)

    return out if Lp == L else out[:, :L]


# ----------------------------------------------------------------------------
# Pure-JAX reference (literal transcription of the PyTorch graph)
# ----------------------------------------------------------------------------
def _median_pool1d_ref(x):
    xp = jnp.concatenate([x, x[:, :2]], axis=1)
    L = x.shape[1]
    w0, w1, w2 = xp[:, 0:L], xp[:, 1:L + 1], xp[:, 2:L + 2]
    return jnp.maximum(jnp.maximum(w0, w1), jnp.minimum(w1, w2))


if __name__ == "__main__":
    key = jax.random.PRNGKey(0)
    k1, k2, k3 = jax.random.split(key, 3)

    # 1) Batch-tiled full-row path (grid=(2,)), lane-dense L.
    B, L = 16, 256
    x = jax.random.normal(k1, (B, L), dtype=jnp.float32)
    out = jax.block_until_ready(median_pool1d(x, block_b=8))
    assert out.shape == (B, L) and out.dtype == x.dtype
    assert jnp.allclose(out, _median_pool1d_ref(x)), "mismatch (block_b=8)"

    # 2) Auto tile selection (single-step grid).
    out_auto = jax.block_until_ready(median_pool1d(x))
    assert jnp.allclose(out_auto, _median_pool1d_ref(x)), "mismatch (auto)"

    # 3) L-tiled halo path (grid=(1, 4)); wrap handled across tile borders.
    x2 = jax.random.normal(k2, (4, 512), dtype=jnp.float32)
    out2 = jax.block_until_ready(median_pool1d(x2, block_l=128))
    assert jnp.allclose(out2, _median_pool1d_ref(x2)), "mismatch (L-tiled)"

    # 4) Non-lane-aligned L (wrap-padded to 128 in the wrapper, sliced back).
    x3 = jax.random.normal(k3, (8, 100), dtype=jnp.float32)
    out3 = jax.block_until_ready(median_pool1d(x3))
    assert out3.shape == (8, 100)
    assert jnp.allclose(out3, _median_pool1d_ref(x3)), "mismatch (padded L)"

    print("KERNEL_OK")
</pallas_src>

<mosaic_0001>
module attributes {stable_mosaic.version = 11 : i64} {
  func.func @_median_pool1d_kernel(%arg0: i32, %arg1: memref<8x256xf32, #tpu.memory_space<vmem>>, %arg2: memref<8x256xf32, #tpu.memory_space<vmem>>) attributes {dimension_semantics = [#tpu.dimension_semantics<parallel>], iteration_bounds = array<i64: 2>, scalar_prefetch = 0 : i64, scratch_operands = 0 : i64, tpu.core_type = #tpu.core_type<tc>, window_params = [{transform_indices = @transform_0, window_bounds = array<i64: 8, 256>}, {transform_indices = @transform_1, window_bounds = array<i64: 8, 256>}]} {
    %c0 = arith.constant 0 : index
    %c0_0 = arith.constant 0 : index
    %0 = vector.load %arg1[%c0, %c0_0] : memref<8x256xf32, #tpu.memory_space<vmem>>, vector<8x256xf32>
    %c255_i32 = arith.constant 255 : i32
    %1 = tpu.dynamic_rotate %0 by %c255_i32 dim 1 : vector<8x256xf32>, i32 -> vector<8x256xf32>
    %2 = arith.maximumf %0, %1 : vector<8x256xf32>
    %c0_1 = arith.constant 0 : index
    %c0_2 = arith.constant 0 : index
    %3 = vector.load %arg2[%c0_1, %c0_2] : memref<8x256xf32, #tpu.memory_space<vmem>>, vector<8x256xf32>
    tpu.vector_store %arg2[%c0_1, %c0_2], %2 {strides = array<i32>} : memref<8x256xf32, #tpu.memory_space<vmem>>, vector<8x256xf32>,
    return
  }
  func.func @transform_0(%arg0: i32) -> (i32, i32) {
    %c0_i32 = arith.constant 0 : i32
    %c0_i32_0 = arith.constant 0 : i32
    return %arg0, %c0_i32 : i32, i32
  }
  func.func @transform_1(%arg0: i32) -> (i32, i32) {
    %c0_i32 = arith.constant 0 : i32
    %c0_i32_0 = arith.constant 0 : i32
    return %arg0, %c0_i32 : i32, i32
  }
}

</mosaic_0001>

<bundles_post_ra>
// kernel: tpu_custom_call.1
= control target key start
LH: loop header
LB: loop body
LE: loop exit
PB: predicated region body
PF: predicated region fallthrough
CT: control target
= control target key end

     0   :  { %6 = vsyncpa [#allocation3], 0  ;;  %s568_s0 = inlined_call_operand.hbm [shape: f32[16,256], index: 0, kind: input, shape index: {}]   ;;  %s569_s1 = inlined_call_operand.hbm [shape: f32[16,256], index: 1, kind: output, shape index: {}]  }
   0x1   :  { %8 = vsyncpa [#allocation3 + $0x1], 0 }
   0x2   :  { %9 = vsyncpa [#allocation4], 0 }
   0x3   :  { %11 = vsyncpa [#allocation4 + $0x1], 0  ;;  %s407_s6 = smov 0   ;;  %s409_s7 = smov 0  }
   0x4   :  { %s411_s8 = smov 0   ;;  %s413_s9 = smov 0  }
   0x5 LB: > { %s428_s10 = sadd.s32 4294967295, %s392_s9   ;;  %s233_s11 = sadd.s32 4294967294, %s392_s9   ;;  %s392_s9 = sphi %s413_s9, %s584_s9   ;;  %s388_s8 = sphi %s411_s8, %s583_s8   ;;  %s384_s7 = sphi %s409_s7, %s582_s7   ;;  %s380_s6 = sphi %s407_s6, %s581_s6  }
   0x6   : > { %s432_s12 = sadd.s32 1, %s392_s9   ;;  %s24_s13 = sadd.s32 1, %s388_s8 }
   0x7   : > { %s21_s14 = ssub.s32 %s392_s9, %s432_s12  ;;  %p31_p0 = scmp.ne.s32.totalorder %s388_s8, %s384_s7 }
   0x8   : > { %p22_p1 = scmp.eq.s32.totalorder %s21_s14, 0  ;;  %p32_p2 = scmp.eq.s32.totalorder %s392_s9, 0 }
   0x9   : > { %p37_p3 = scmp.ne.s32.totalorder %s384_s7, %s380_s6  ;;  %p38_p4 = scmp.eq.s32.totalorder %s428_s10, 0 }
   0xa   : > { %s444_s15 = scalar_select %p22_p1, %s388_s8, %s24_s13  }
   0xb   : > { %p446_p5 = por %p32_p2, %p31_p0  ;;  %p450_p6 = por %p38_p4, %p37_p3 }
   0xc   : > { %p61_p7 = scmp.eq.s32.totalorder %s428_s10, 1  ;;  %p67_p8 = scmp.eq.s32.totalorder %s233_s11, 1 }
   0xd   : > { %p261_p10 = scmp.lt.s32.totalorder %s392_s9, 2  ;;  %s87_s20 = sand.u32 1, %s388_s8  }
   0xe   : > { %p457_p11 = por %p61_p7, %p31_p0  ;;  %p461_p12 = por %p67_p8, %p37_p3 }
   0xf   : > { %s247_s21 = sshll.u32 %s392_s9, 8  ;;  %s236_s22 = sshll.u32 %s87_s20, 4 }
  0x10   : > { %s573_s18 = scalar_select %p457_p11, 1, 0 }
  0x11   : > { %s574_s19 = scalar_select %p461_p12, 1, 0 }
  0x12   : > { %s470_s25 = scalar_lea.hbm %s568_s0, %s247_s21  ;;  %s91_s26 = scalar_lea.vmem [#allocation2], %s236_s22 }
  0x13   : > { %s99_s27 = sshll.u32 %s91_s26, 4  ;;  %p474_p13 = pnand %p261_p10, %p446_p5  ;;  %s478_s27 = int_to_ptr.vmem [resolvable:$true] %s99_s27 }
  0x14   : > { %s88_s29 = scalar_lea.sflag [#allocation3], %s87_s20  ;;  %s296_s30 = scalar_lea.hbm %s470_s25, 256 }
  0x15   : > { %p297_p2 = scmp.ne.s32.totalorder %s470_s25, %s296_s30  ;;  %p298_p3 = pneg %p474_p13 }
  0x16   : > { %s301_s4 = scalar_lea.hbm %s568_s0, 512  ;;  %p302_p5 = scmp.lt.u32.totalorder %s470_s25, %s568_s0 }
  0x17   : > { %p299_p4 = pnand %p298_p3, %p297_p2  ;;  %p303_p8 = scmp.lt.u32.totalorder %s301_s4, %s296_s30 }
  0x18   : > { %p305_p9 = scmp.lt.u32.totalorder %s296_s30, %s470_s25 }
  0x19   : > { %p300_p7 = pneg %p299_p4  ;;  %p304_p10 = por %p303_p8, %p302_p5 }
  0x1b   : > { %p306_p0 = por %p305_p9, %p304_p10 }
  0x1d   : > { %p307_p1 = pnand %p306_p0, %p300_p7 }
  0x1f   : > { %310 = shalt.err (!%p307_p1)
}
  0x20   : > { %s311_s13 = scalar_lea.vmem %s478_s27, 256  ;;  %s394_s14 = smov [#allocation2]  }
  0x21   : > { %p312_p2 = scmp.ne.s32.totalorder %s478_s27, %s311_s13  ;;  %s316_s16 = sshll.u32 %s394_s14, 4  ;;  %s317_s16 = int_to_ptr.vmem [resolvable:$false] %s316_s16 }
  0x22   : > { %s318_s20 = scalar_lea.vmem %s317_s16, 512  ;;  %p319_p11 = scmp.lt.s32.totalorder %s478_s27, %s317_s16 }
  0x23   : > { %p314_p4 = pnand %p312_p2, %p298_p3  ;;  %p320_p5 = scmp.lt.s32.totalorder %s318_s20, %s311_s13 }
  0x25   : > { %p315_p12 = pneg %p314_p4  ;;  %p321_p8 = por %p320_p5, %p319_p11 }
  0x27   : > { %p322_p9 = pnand %p321_p8, %p315_p12 }
  0x29   : > { %325 = shalt.err (!%p322_p9)
}
  0x2a   : > { %256 = dma.hbm_to_vmem [thread:$0]  (!%p474_p13), %s470_s25, 256, %s478_s27, %s88_s29  }
  0x2b   : > { %p576_p0 = scmp.lt.s32.totalorder %s392_s9, 3  ;;  %p577_p1 = scmp.ge.s32.totalorder %s392_s9, 1 }
  0x2d   : > { %p105_p3 = pnand %p577_p1, %p576_p0 }
  0x2e   : > { %s512_s21 = sand.u32 (!%p105_p3), 1, %s384_s7  }
  0x2f   : > { %108 = sbr.rel (%p105_p3) target bundleno = 192 (0xc0), region = 24  ;;  %s240_s22 = sshll.u32 (!%p105_p3), %s512_s21, 4 }
  0x30   : > { %s111_s23 = scalar_lea.sflag (!%p105_p3), [#allocation3], %s512_s21  ;;  %s114_s24 = scalar_lea.vmem (!%p105_p3), [#allocation2], %s240_s22 }
  0x36   : > { %371 = dma.done.wait (%p450_p6), %s111_s23, 256  }
  0x37   : > { %373 = vsyncadd (%p450_p6), %s111_s23, 4294967040  ;;  %v133_v0 = vld [vmem:[%s114_s24] sm:$0xff]  ;;  %s395_s25 = smov 127   ;;  %v134_v1 = vld [vmem:[%s114_s24 + $0x8] sm:$0xff]  ;;  %v139_v2 = vlaneseq  ;;  %s248_s26 = sshll.u32 %s428_s10, 8 }
  0x38   : > { %135 = vrot.lane.b32.xlu0 %v133_v0, %s395_s25  ;;  %s132_s27 = scalar_lea.vmem [#allocation5], %s240_s22  ;;  %s524_s30 = scalar_lea.hbm %s569_s1, %s248_s26 }
  0x39   : > { %v140_v3 = vand.u32 127, %v139_v2  ;;  %s163_s28 = sshll.u32 %s132_s27, 4  ;;  %s149_s10 = scalar_lea.sflag [#allocation4], %s512_s21  ;;  %s526_s28 = int_to_ptr.vmem [resolvable:$true] %s163_s28 }
  0x3a   : > { %s326_s2 = scalar_lea.vmem %s526_s28, 256  ;;  %p578_p11 = scmp.ne.s32.totalorder %s573_s18, 0 }
  0x3b   : > { %vm141_vm0 = vcmp.lt.s32.totalorder %v140_v3, 127  ;;  %p327_p6 = scmp.ne.s32.totalorder %s526_s28, %s326_s2  ;;  %s396_s3 = smov [#allocation5]  }
  0x3c   : > { %137 = vrot.lane.b32.xlu0 %v134_v1, %s395_s25  ;;  %s330_s4 = sshll.u32 %s396_s3, 4  ;;  %s331_s4 = int_to_ptr.vmem [resolvable:$false] %s330_s4 }
  0x3d   : > { %p328_p12 = pnand %p327_p6, %p578_p11  ;;  %s332_s5 = scalar_lea.vmem %s331_s4, 512 }
  0x3e   : > { %p333_p7 = scmp.lt.s32.totalorder %s526_s28, %s331_s4  ;;  %p334_p10 = scmp.lt.s32.totalorder %s332_s5, %s326_s2 }
  0x3f   : > { %p329_p13 = pneg %p328_p12 }
  0x40   : > { %p335_p2 = por %p334_p10, %p333_p7 }
  0x42   : > { %p336_p4 = pnand %p335_p2, %p329_p13 }
  0xaa   : > { %v136_v4 = vpop.permute.xlu0 %135 }
  0xae   : > { %v138_v5 = vpop.permute.xlu0 %137 }
  0xaf   : > { %v142_v6 = vsel %vm141_vm0, %v136_v4, %v138_v5  ;;  %v143_v7 = vsel %vm141_vm0, %v138_v5, %v136_v4 }
  0xb0   : > { %v144_v8 = vmax.f32 %v133_v0, %v142_v6  ;;  %v145_v9 = vmax.f32 %v134_v1, %v143_v7 }
  0xb2   : > { %146 = vst [vmem:[%s132_s27] sm:$0xff] %v144_v8  ;;  %147 = vst [vmem:[%s132_s27 + $0x8] sm:$0xff] %v145_v9 }
  0xb3   : > { %339 = shalt.err (!%p336_p4)
}
  0xb4   : > { %s340_s11 = scalar_lea.hbm %s524_s30, 256  ;;  %s344_s16 = scalar_lea.hbm %s569_s1, 512 }
  0xb5   : > { %p341_p5 = scmp.ne.s32.totalorder %s524_s30, %s340_s11  ;;  %p345_p0 = scmp.lt.u32.totalorder %s524_s30, %s569_s1 }
  0xb6   : > { %p346_p1 = scmp.lt.u32.totalorder %s344_s16, %s340_s11  ;;  %p348_p6 = scmp.lt.u32.totalorder %s340_s11, %s524_s30 }
  0xb7   : > { %p342_p8 = pnand %p341_p5, %p578_p11 }
  0xb8   : > { %p347_p3 = por %p346_p1, %p345_p0 }
  0xb9   : > { %p343_p9 = pneg %p342_p8 }
  0xba   : > { %p349_p12 = por %p348_p6, %p347_p3 }
  0xbc   : > { %p350_p13 = pnand %p349_p12, %p343_p9 }
  0xbe   : > { %353 = shalt.err (!%p350_p13)
}
  0xbf   : > { %251 = dma.vmem_to_hbm [thread:$0]  (%p578_p11), %s526_s28, 256, %s524_s30, %s149_s10  }
  0xc0 PF: > { %s175_s22 = sand.u32 1, %s380_s6   ;;  %p579_p7 = scmp.ne.s32.totalorder %s574_s19, 0 }
  0xc1   : > { %p580_p10 = scmp.ge.s32.totalorder %s392_s9, 2  ;;  %s176_s23 = scalar_lea.sflag [#allocation4], %s175_s22 }
  0xc3   : > { %p258_p2 = pnand %p580_p10, %p579_p7 }
  0xc5   : > { %375 = dma.done.wait (!%p258_p2), %s176_s23, 256  }
  0xc6   : > { %377 = vsyncadd (!%p258_p2), %s176_s23, 4294967040  ;;  %p14_p4 = scmp.ge.s32.totalorder %s432_s12, 4   ;;  %s581_s6 = smov %s384_s7 }
  0xc7   : > { %s582_s7 = smov %s388_s8  ;;  %s583_s8 = smov %s444_s15 }
  0xc8   : > { %s584_s9 = smov %s432_s12  ;;  %16 = sbr.rel (!%p14_p4) target bundleno = 5 (0x5), region = 69 }
  0xcf   :  { %181 = vsyncpa [#allocation3], 1 }
  0xd0   :  { %183 = vsyncpa [#allocation3 + $0x1], 1 }
  0xd1   :  { %184 = vsyncpa [#allocation4], 1 }
  0xd2   :  { %186 = vsyncpa [#allocation4 + $0x1], 1 }

</bundles_post_ra>
